<compile_context>
chip_gen: v7x
topology: tpu7x:2x2x1
jax: 0.10.0
libtpu: 0.0.40
codegen_flags: <defaults>
</compile_context>

<pallas_src>
import functools

import jax
import jax.numpy as jnp
from jax import lax
from jax.experimental import pallas as pl
from jax.experimental.pallas import tpu as pltpu


def _round_up(x: int, m: int) -> int:
    return ((x + m - 1) // m) * m


def _pick_tile_m(batch: int) -> int:
    """Adaptive batch tile: multiple of 256, capped at 1024, and at least two
    grid tiles whenever the batch spans more than one minimal tile (v7x)."""
    tile = min(_round_up(max(batch, 1), 256), 1024)
    if batch > 256 and tile >= batch:
        tile = _round_up((batch + 1) // 2, 256)
    return tile


def _value_kernel(x_ref, w1_ref, b1_ref, w2_ref, b2_ref, wv_ref, bv_ref, out_ref):
    # Cast the f32 state tile to bf16 in-kernel (no wrapper HBM round trip).
    x = x_ref[...].astype(w1_ref.dtype)

    # fc1: bf16 x bf16 on the MXU (K = raw input dim, MXU masks K < 128),
    # f32 accumulation; bias + ReLU in f32 (VPU).
    h1 = jnp.dot(x, w1_ref[...], preferred_element_type=jnp.float32)
    h1 = jnp.maximum(h1 + b1_ref[...], 0.0)

    # fc2: cast activations back to bf16 so the MXU stays on its fast path.
    h2 = jnp.dot(h1.astype(w2_ref.dtype), w2_ref[...],
                 preferred_element_type=jnp.float32)
    h2 = jnp.maximum(h2 + b2_ref[...], 0.0)

    # Value head: lane-dense (1, fc2) bf16 weight row contracted against
    # bf16 h2 along fc2 (NT contraction) -> lane-dense (1, TILE_M) f32 row.
    v_row = lax.dot_general(
        wv_ref[...], h2.astype(wv_ref.dtype),
        dimension_numbers=(((1,), (1,)), ((), ())),
        preferred_element_type=jnp.float32,
    )

    # Lane-dense store; bias is a free SMEM scalar read.
    out_ref[...] = (v_row + bv_ref[0, 0])[None].astype(out_ref.dtype)


@functools.partial(jax.jit, static_argnames=("tile_m",))
def value_network_forward(state, w1, b1, w2, b2, wv_row, bv, *, tile_m=None):
    """Fused SAC value-network forward.

    state   : [B, D] float32 array (unpadded, fed directly to the kernel).
    w1      : [D, fc1]   bf16 weight.
    b1, b2  : [1, fc1] / [1, fc2] float32 biases.
    w2      : [fc1, fc2] bf16 weight.
    wv_row  : [1, fc2]   bf16 value-head weight (lane-dense row layout).
    bv      : [1, 1]     float32 value-head bias (placed in SMEM).
    Returns : [B, 1] float32.
    """
    B, D = state.shape
    D_w, fc1 = w1.shape
    fc2 = w2.shape[1]
    if tile_m is None:
        tile_m = _pick_tile_m(B)
    assert tile_m % 16 == 0                      # bf16 sublane tile is (16, 128)
    assert D == D_w and w2.shape[0] == fc1 and wv_row.shape == (1, fc2)

    num_tiles = pl.cdiv(B, tile_m)
    b_pad = num_tiles * tile_m

    out = pl.pallas_call(
        _value_kernel,
        out_shape=jax.ShapeDtypeStruct((num_tiles, 1, tile_m), jnp.float32),
        grid=(num_tiles,),
        in_specs=[
            pl.BlockSpec((tile_m, D), lambda i: (i, 0)),         # state tile (boundary blocks OK)
            pl.BlockSpec((D, fc1), lambda i: (0, 0)),            # w1 (VMEM-resident)
            pl.BlockSpec((1, fc1), lambda i: (0, 0)),            # b1 (resident)
            pl.BlockSpec((fc1, fc2), lambda i: (0, 0)),          # w2 (resident)
            pl.BlockSpec((1, fc2), lambda i: (0, 0)),            # b2 (resident)
            pl.BlockSpec((1, fc2), lambda i: (0, 0)),            # wv row (resident)
            pl.BlockSpec(memory_space=pltpu.MemorySpace.SMEM),   # bv scalar
        ],
        out_specs=pl.BlockSpec((1, 1, tile_m), lambda i: (i, 0, 0)),
        compiler_params=pltpu.CompilerParams(
            dimension_semantics=("parallel",),
        ),
    )(state, w1, b1, w2, b2, wv_row, bv)

    # Lane-dense slabs -> (B, 1), dropping the padded batch lanes.
    return out.reshape(b_pad, 1)[:B]


def prepare_params(w1, b1, w2, b2, wv, bv, *, compute_dtype=jnp.bfloat16):
    """One-time packing of (in, out)-layout Linear params for the kernel: cast
    all three matmul weights to the MXU compute dtype (no feature padding — the
    MXU masks short K), put wv in lane-dense (1, fc2) row layout and bv in a
    (1, 1) SMEM scalar. Biases stay float32."""
    D, fc1 = w1.shape
    fc2 = w2.shape[1]
    del D
    return (
        jnp.asarray(w1, compute_dtype),
        jnp.asarray(b1, jnp.float32).reshape(1, fc1),
        jnp.asarray(w2, compute_dtype),
        jnp.asarray(b2, jnp.float32).reshape(1, fc2),
        jnp.asarray(wv, compute_dtype).reshape(1, fc2),
        jnp.asarray(bv, jnp.float32).reshape(1, 1),
    )


def reference_forward(state, w1, b1, w2, b2, wv, bv, *, compute_dtype=jnp.bfloat16):
    """Pure-JAX reference applying the same low-precision casts as the kernel."""
    f32 = jnp.float32
    hp = lax.Precision.HIGHEST
    x = state.astype(compute_dtype).astype(f32)
    w1c = jnp.asarray(w1, compute_dtype).astype(f32)
    w2c = jnp.asarray(w2, compute_dtype).astype(f32)
    wvc = jnp.asarray(wv, compute_dtype).astype(f32)
    h1 = jnp.maximum(jnp.dot(x, w1c, precision=hp) + jnp.asarray(b1, f32), 0.0)
    h1 = h1.astype(compute_dtype).astype(f32)
    h2 = jnp.maximum(jnp.dot(h1, w2c, precision=hp) + jnp.asarray(b2, f32), 0.0)
    h2 = h2.astype(compute_dtype).astype(f32)
    return jnp.dot(h2, wvc, precision=hp) + jnp.asarray(bv, f32)


def init_linear_params(key, fan_in, fan_out):
    """Deterministic init mimicking PyTorch nn.Linear default:
    U(-1/sqrt(fan_in), 1/sqrt(fan_in)) for weight and bias.
    Weight returned as (fan_in, fan_out) (transposed vs. PyTorch)."""
    kw, kb = jax.random.split(key)
    bound = 1.0 / jnp.sqrt(jnp.float32(fan_in))
    w = jax.random.uniform(kw, (fan_in, fan_out), jnp.float32, -bound, bound)
    b = jax.random.uniform(kb, (1, fan_out), jnp.float32, -bound, bound)
    return w, b


# TODO(synk): Adam optimizer state and checkpoint save/load from the PyTorch
# module are host-side utilities, not part of the forward pass.

if __name__ == "__main__":
    # Module-consistent small shapes: batch=2, input_dims=(8,), fc1=fc2=256.
    B = 2
    input_dims = 8
    fc1_dims = 256
    fc2_dims = 256

    key = jax.random.PRNGKey(0)
    k_state, k_state2, k1, k2, k3 = jax.random.split(key, 5)

    state = jax.random.normal(k_state, (B, input_dims), jnp.float32)
    w1, b1 = init_linear_params(k1, input_dims, fc1_dims)
    w2, b2 = init_linear_params(k2, fc1_dims, fc2_dims)
    wv, bv = init_linear_params(k3, fc2_dims, 1)

    params = prepare_params(w1, b1, w2, b2, wv, bv, compute_dtype=jnp.bfloat16)

    # Small batch (B=2): single adaptive tile, Pallas boundary block handles
    # the short batch (no wrapper pad / cast op).
    v = jax.block_until_ready(value_network_forward(state, *params))
    v_ref = reference_forward(state, w1, b1, w2, b2, wv, bv,
                              compute_dtype=jnp.bfloat16)
    assert v.shape == (B, 1)
    assert jnp.allclose(v, v_ref, atol=2e-3, rtol=2e-3)

    # Larger, non-multiple-of-tile batch: adaptive tiling picks 2x256 tiles
    # (keeps both v7x TensorCores busy) and exercises the boundary-block path.
    B2 = 300
    state2 = jax.random.normal(k_state2, (B2, input_dims), jnp.float32)
    v2 = jax.block_until_ready(value_network_forward(state2, *params))
    v2_ref = reference_forward(state2, w1, b1, w2, b2, wv, bv,
                               compute_dtype=jnp.bfloat16)
    assert v2.shape == (B2, 1)
    assert jnp.allclose(v2, v2_ref, atol=2e-3, rtol=2e-3)

    print("KERNEL_OK")
</pallas_src>

<mosaic_0001>
module attributes {stable_mosaic.version = 11 : i64} {
  func.func @_value_kernel(%arg0: i32, %arg1: memref<256x8xf32, #tpu.memory_space<vmem>>, %arg2: memref<8x256xbf16, #tpu.memory_space<vmem>>, %arg3: memref<1x256xf32, #tpu.memory_space<vmem>>, %arg4: memref<256x256xbf16, #tpu.memory_space<vmem>>, %arg5: memref<1x256xf32, #tpu.memory_space<vmem>>, %arg6: memref<1x256xbf16, #tpu.memory_space<vmem>>, %arg7: memref<1x1xf32, #tpu.memory_space<smem>>, %arg8: memref<1x1x256xf32, #tpu.memory_space<vmem>>) attributes {dimension_semantics = [#tpu.dimension_semantics<parallel>], iteration_bounds = array<i64: 1>, scalar_prefetch = 0 : i64, scratch_operands = 0 : i64, tpu.core_type = #tpu.core_type<tc>, window_params = [{transform_indices = @transform_0, window_bounds = array<i64: 256, 8>}, {pipeline_mode = #tpu.pipeline_mode<synchronous>, transform_indices = @transform_1, window_bounds = array<i64: 8, 256>}, {pipeline_mode = #tpu.pipeline_mode<synchronous>, transform_indices = @transform_2, window_bounds = array<i64: 1, 256>}, {pipeline_mode = #tpu.pipeline_mode<synchronous>, transform_indices = @transform_3, window_bounds = array<i64: 256, 256>}, {pipeline_mode = #tpu.pipeline_mode<synchronous>, transform_indices = @transform_4, window_bounds = array<i64: 1, 256>}, {pipeline_mode = #tpu.pipeline_mode<synchronous>, transform_indices = @transform_5, window_bounds = array<i64: 1, 256>}, {transform_indices = @transform_6, window_bounds = array<i64: 1, 1>}, {transform_indices = @transform_7, window_bounds = array<i64: 1, 1, 256>}]} {
    %c0 = arith.constant 0 : index
    %c0_0 = arith.constant 0 : index
    %0 = vector.load %arg1[%c0, %c0_0] : memref<256x8xf32, #tpu.memory_space<vmem>>, vector<256x8xf32>
    %1 = arith.truncf %0 : vector<256x8xf32> to vector<256x8xbf16>
    %c0_1 = arith.constant 0 : index
    %c0_2 = arith.constant 0 : index
    %2 = vector.load %arg2[%c0_1, %c0_2] : memref<8x256xbf16, #tpu.memory_space<vmem>>, vector<8x256xbf16>
    %cst = arith.constant dense<0.000000e+00> : vector<256x256xf32>
    %3 = tpu.matmul %1, %2, %cst {dimension_numbers = #tpu.dot_dimension_numbers<[1], [0], [0], [1], [0, 0, 1, 1], [], []>} : vector<256x8xbf16>, vector<8x256xbf16>, vector<256x256xf32> -> vector<256x256xf32>
    %c0_3 = arith.constant 0 : index
    %c0_4 = arith.constant 0 : index
    %4 = vector.load %arg3[%c0_3, %c0_4] : memref<1x256xf32, #tpu.memory_space<vmem>>, vector<1x256xf32>
    %5 = vector.broadcast %4 : vector<1x256xf32> to vector<256x256xf32>
    %6 = arith.addf %3, %5 : vector<256x256xf32>
    %cst_5 = arith.constant 0.000000e+00 : f32
    %7 = vector.broadcast %cst_5 : f32 to vector<256x256xf32>
    %8 = arith.maximumf %6, %7 : vector<256x256xf32>
    %9 = arith.truncf %8 : vector<256x256xf32> to vector<256x256xbf16>
    %c0_6 = arith.constant 0 : index
    %c0_7 = arith.constant 0 : index
    %10 = vector.load %arg4[%c0_6, %c0_7] : memref<256x256xbf16, #tpu.memory_space<vmem>>, vector<256x256xbf16>
    %cst_8 = arith.constant dense<0.000000e+00> : vector<256x256xf32>
    %11 = tpu.matmul %9, %10, %cst_8 {dimension_numbers = #tpu.dot_dimension_numbers<[1], [0], [0], [1], [0, 0, 1, 1], [], []>} : vector<256x256xbf16>, vector<256x256xbf16>, vector<256x256xf32> -> vector<256x256xf32>
    %c0_9 = arith.constant 0 : index
    %c0_10 = arith.constant 0 : index
    %12 = vector.load %arg5[%c0_9, %c0_10] : memref<1x256xf32, #tpu.memory_space<vmem>>, vector<1x256xf32>
    %13 = vector.broadcast %12 : vector<1x256xf32> to vector<256x256xf32>
    %14 = arith.addf %11, %13 : vector<256x256xf32>
    %cst_11 = arith.constant 0.000000e+00 : f32
    %15 = vector.broadcast %cst_11 : f32 to vector<256x256xf32>
    %16 = arith.maximumf %14, %15 : vector<256x256xf32>
    %c0_12 = arith.constant 0 : index
    %c0_13 = arith.constant 0 : index
    %17 = vector.load %arg6[%c0_12, %c0_13] : memref<1x256xbf16, #tpu.memory_space<vmem>>, vector<1x256xbf16>
    %18 = arith.truncf %16 : vector<256x256xf32> to vector<256x256xbf16>
    %cst_14 = arith.constant dense<0.000000e+00> : vector<1x256xf32>
    %19 = tpu.matmul %17, %18, %cst_14 {dimension_numbers = #tpu.dot_dimension_numbers<[1], [1], [0], [0], [0, 0, 1, 0], [], []>} : vector<1x256xbf16>, vector<256x256xbf16>, vector<1x256xf32> -> vector<1x256xf32>
    %c0_15 = arith.constant 0 : index
    %c0_16 = arith.constant 0 : index
    %20 = memref.load %arg7[%c0_15, %c0_16] : memref<1x1xf32, #tpu.memory_space<smem>>
    %21 = vector.broadcast %20 : f32 to vector<1x256xf32>
    %22 = arith.addf %19, %21 : vector<1x256xf32>
    %23 = vector.shape_cast %22 : vector<1x256xf32> to vector<1x1x256xf32>
    %c0_17 = arith.constant 0 : index
    %c0_18 = arith.constant 0 : index
    %c0_19 = arith.constant 0 : index
    %24 = vector.load %arg8[%c0_17, %c0_18, %c0_19] : memref<1x1x256xf32, #tpu.memory_space<vmem>>, vector<1x1x256xf32>
    tpu.vector_store %arg8[%c0_17, %c0_18, %c0_19], %23 {strides = array<i32>} : memref<1x1x256xf32, #tpu.memory_space<vmem>>, vector<1x1x256xf32>,
    return
  }
  func.func @transform_0(%arg0: i32) -> (i32, i32) {
    %c0_i32 = arith.constant 0 : i32
    %c0_i32_0 = arith.constant 0 : i32
    return %arg0, %c0_i32 : i32, i32
  }
  func.func @transform_1(%arg0: i32) -> (i32, i32) {
    %c0_i32 = arith.constant 0 : i32
    %c0_i32_0 = arith.constant 0 : i32
    %c0_i32_1 = arith.constant 0 : i32
    return %c0_i32, %c0_i32_0 : i32, i32
  }
  func.func @transform_2(%arg0: i32) -> (i32, i32) {
    %c0_i32 = arith.constant 0 : i32
    %c0_i32_0 = arith.constant 0 : i32
    %c0_i32_1 = arith.constant 0 : i32
    return %c0_i32, %c0_i32_0 : i32, i32
  }
  func.func @transform_3(%arg0: i32) -> (i32, i32) {
    %c0_i32 = arith.constant 0 : i32
    %c0_i32_0 = arith.constant 0 : i32
    %c0_i32_1 = arith.constant 0 : i32
    return %c0_i32, %c0_i32_0 : i32, i32
  }
  func.func @transform_4(%arg0: i32) -> (i32, i32) {
    %c0_i32 = arith.constant 0 : i32
    %c0_i32_0 = arith.constant 0 : i32
    %c0_i32_1 = arith.constant 0 : i32
    return %c0_i32, %c0_i32_0 : i32, i32
  }
  func.func @transform_5(%arg0: i32) -> (i32, i32) {
    %c0_i32 = arith.constant 0 : i32
    %c0_i32_0 = arith.constant 0 : i32
    %c0_i32_1 = arith.constant 0 : i32
    return %c0_i32, %c0_i32_0 : i32, i32
  }
  func.func @transform_6(%arg0: i32) -> (i32, i32) {
    %c0_i32 = arith.constant 0 : i32
    %c0_i32_0 = arith.constant 0 : i32
    %c0_i32_1 = arith.constant 0 : i32
    return %c0_i32, %c0_i32_0 : i32, i32
  }
  func.func @transform_7(%arg0: i32) -> (i32, i32, i32) {
    %c0_i32 = arith.constant 0 : i32
    %c0_i32_0 = arith.constant 0 : i32
    %c0_i32_1 = arith.constant 0 : i32
    return %arg0, %c0_i32, %c0_i32_0 : i32, i32, i32
  }
}

</mosaic_0001>

<bundles_post_ra>
// kernel: value_network_forward.1
= control target key start
LH: loop header
LB: loop body
LE: loop exit
PB: predicated region body
PF: predicated region fallthrough
CT: control target
= control target key end

     0   :  { %13 = vsyncpa [#allocation4], 0  ;;  %s1594_s0 = inlined_call_operand.vmem [shape: f32[2,8], index: 0, kind: input, shape index: {}]   ;;  %s1595_s1 = inlined_call_operand.hbm [shape: bf16[8,256], index: 1, kind: input, shape index: {}]   ;;  %s1596_s2 = inlined_call_operand.vmem [shape: f32[1,256], index: 2, kind: input, shape index: {}]   ;;  %s1597_s3 = inlined_call_operand.hbm [shape: bf16[256,256], index: 3, kind: input, shape index: {}]   ;;  %s1598_s4 = inlined_call_operand.vmem [shape: f32[1,256], index: 4, kind: input, shape index: {}]   ;;  %s1599_s5 = inlined_call_operand.vmem [shape: bf16[1,256], index: 5, kind: input, shape index: {}]   ;;  %s1600_s6 = inlined_call_operand.<no memory space> [shape: f32[1,1], index: 6, kind: input, shape index: {}]   ;;  %s1601_s7 = inlined_call_operand.vmem [shape: f32[1,1,256], index: 7, kind: output, shape index: {}]  }
   0x1   :  { %14 = vsyncpa [#allocation6], 0  ;;  %s1212_s24 = smov [#allocation3]   ;;  %s1213_s26 = smov [#allocation5]  }
   0x2   :  { %s23_s25 = sshll.u32 %s1212_s24, 4  ;;  %s34_s27 = sshll.u32 %s1213_s26, 4  ;;  %s24_s25 = int_to_ptr.vmem [resolvable:$true] %s23_s25  ;;  %s1258_s27 = int_to_ptr.vmem [resolvable:$true] %s34_s27 }
   0x3   :  { %s1164_s30 = scalar_lea.hbm %s1595_s1, 128 }
   0x4   :  { %p1165_p0 = scmp.ne.s32.totalorder %s1595_s1, %s1164_s30  ;;  %p1168_p1 = scmp.lt.u32.totalorder %s1164_s30, %s1595_s1 }
   0x6   :  { %p1170_p2 = pnand %p1168_p1, %p1165_p0 }
   0x8   :  { %1173 = shalt.err (!%p1170_p2)
}
   0x9   :  { %s1174_s12 = scalar_lea.vmem %s24_s25, 128  ;;  %p1179_p4 = scmp.lt.s32.totalorder %s24_s25, %s24_s25 }
   0xa   :  { %p1175_p3 = scmp.ne.s32.totalorder %s24_s25, %s1174_s12  ;;  %p1180_p5 = scmp.lt.s32.totalorder %s1174_s12, %s1174_s12 }
   0xc   :  { %p1181_p6 = por %p1180_p5, %p1179_p4 }
   0xe   :  { %p1182_p7 = pnand %p1181_p6, %p1175_p3 }
  0x10   :  { %1185 = shalt.err (!%p1182_p7)
}
  0x11   :  { %26 = dma.hbm_to_vmem [thread:$0]  %s1595_s1, 128, %s24_s25, [#allocation4]  }
  0x12   :  { %s1186_s17 = scalar_lea.hbm %s1597_s3, 4096 }
  0x13   :  { %p1187_p8 = scmp.ne.s32.totalorder %s1597_s3, %s1186_s17  ;;  %p1190_p9 = scmp.lt.u32.totalorder %s1186_s17, %s1597_s3 }
  0x15   :  { %p1192_p10 = pnand %p1190_p9, %p1187_p8 }
  0x17   :  { %1195 = shalt.err (!%p1192_p10)
}
  0x18   :  { %s1196_s22 = scalar_lea.vmem %s1258_s27, 4096  ;;  %p1201_p12 = scmp.lt.s32.totalorder %s1258_s27, %s1258_s27 }
  0x19   :  { %p1197_p11 = scmp.ne.s32.totalorder %s1258_s27, %s1196_s22  ;;  %p1202_p13 = scmp.lt.s32.totalorder %s1196_s22, %s1196_s22 }
  0x1b   :  { %p1203_p0 = por %p1202_p13, %p1201_p12 }
  0x1d   :  { %p1204_p1 = pnand %p1203_p0, %p1197_p11 }
  0x1f   :  { %1207 = shalt.err (!%p1204_p1)
}
  0x20   :  { %s1214_s1 = smov 128   ;;  %s1215_s23 = smov 8  }
  0x21   :  { %40 = dma.hbm_to_vmem [thread:$0]  %s1597_s3, 4096, %s1258_s27, [#allocation6], %s1214_s1, %s1214_s1, %s1215_s23  }
  0x22   :  { %1208 = dma.done.wait [#allocation4], 128  }
  0x23   :  { %1209 = vsyncadd [#allocation4], 4294967168 }
  0x24   :  { %1210 = dma.done.wait [#allocation6], 4096  }
  0x25   :  { %1211 = vsyncadd [#allocation6], 4294963200  ;;  %v1216_v0 = vmov 0   ;;  %v102_v1 = vld [vmem:[#allocation3] sm:$0xff]  ;;  %vm169_vm0 = vcmask 1043456   ;;  %v55_v3 = vld [vmem:[%s1594_s0 + $0x8] sm:$0xff] }
  0x26   :  { %208 = vmatprep.mubr.bf16.mxu0 %v1216_v0  ;;  %v54_v2 = vld [vmem:[%s1594_s0] sm:$0xff]  ;;  %v1057_v4 = vcombine.high %v102_v1, %v102_v1  ;;  %v1056_v5 = vcombine.low %v102_v1, %v102_v1  ;;  %vm120_vm1 = vcmask 64512   ;;  %v56_v8 = vld [vmem:[%s1594_s0 + $0x10] sm:$0xff]  ;;  %v57_v9 = vld [vmem:[%s1594_s0 + $0x18] sm:$0xff] }
  0x27   :  { %v86_v7 = vpack.c.bf16 %v55_v3, %v54_v2  ;;  %v87_v10 = vpack.c.bf16 %v57_v9, %v56_v8  ;;  %v1116_v11 = vld [vmem:[#allocation5 + $0x4] ss:$8 sps:$4 sm:$0xff]   ;;  %v1118_v12 = vld [vmem:[#allocation5] ss:$8 sps:$4 sm:$0xff]   ;;  %v1119_v13 = vld [vmem:[#allocation5 + $0x14] ss:$8 sps:$4 sm:$0xff]  }
  0x28   :  { %1058 = vmatprep.subr.msk.bf16.mxu0 %vm169_vm0, %v1057_v4  ;;  %v171_v6 = vsel %vm169_vm0, %v1056_v5, 0  ;;  %669 = vmatprep.subr.bf16.mxu1 %v1116_v11  ;;  %v58_v14 = vld [vmem:[%s1594_s0 + $0x20] sm:$0xff]  ;;  %v1122_v16 = vld [vmem:[#allocation5 + $0x24] ss:$8 sps:$4 sm:$0xff]   ;;  %v1124_v18 = vld [vmem:[#allocation5 + $0x20] ss:$8 sps:$4 sm:$0xff]  }
  0x29   :  { %177 = vmatpush1.bf16.msra.mxu0 %v171_v6  ;;  %670 = vmatpush1.bf16.msra.mxu1 %v1118_v12  ;;  %v1121_v15 = vld [vmem:[#allocation5 + $0x10] ss:$8 sps:$4 sm:$0xff]   ;;  %v59_v17 = vld [vmem:[%s1594_s0 + $0x28] sm:$0xff]  ;;  %v1125_v20 = vld [vmem:[#allocation5 + $0x34] ss:$8 sps:$4 sm:$0xff]  }
  0x2a   :  { %671 = vmatprep.subr.bf16.mxu1 %v1119_v13  ;;  %v88_v19 = vpack.c.bf16 %v59_v17, %v58_v14  ;;  %v60_v21 = vld [vmem:[%s1594_s0 + $0x30] sm:$0xff]  ;;  %v1127_v22 = vld [vmem:[#allocation5 + $0x30] ss:$8 sps:$4 sm:$0xff]   ;;  %v1131_v27 = vld [vmem:[#allocation5 + $0x54] ss:$8 sps:$4 sm:$0xff]  }
  0x2b   :  { %v1128_v23 = vld [vmem:[#allocation5 + $0x44] ss:$8 sps:$4 sm:$0xff]   ;;  %v61_v24 = vld [vmem:[%s1594_s0 + $0x38] sm:$0xff]  ;;  %v1130_v25 = vld [vmem:[#allocation5 + $0x40] ss:$8 sps:$4 sm:$0xff]  }
  0x2c   :  { %1059 = vmatmul.mubr.msk.bf16.vlgmr.msra.gmra.mrb[0].mxu0 %vm120_vm1, %v86_v7  ;;  %v89_v26 = vpack.c.bf16 %v61_v24, %v60_v21  ;;  %v1133_v28 = vld [vmem:[#allocation5 + $0x50] ss:$8 sps:$4 sm:$0xff]   ;;  %v1134_v29 = vld [vmem:[#allocation5 + $0x64] ss:$8 sps:$4 sm:$0xff]   ;;  %v1136_v32 = vld [vmem:[#allocation5 + $0x60] ss:$8 sps:$4 sm:$0xff]  }
  0x2d   :  { %218 = vmatprep.mubr.bf16.mxu0 %v1216_v0  ;;  %672 = vmatpush1.bf16.msra.mxu1 %v1121_v15  ;;  %v62_v30 = vld [vmem:[%s1594_s0 + $0x40] sm:$0xff]  ;;  %v63_v31 = vld [vmem:[%s1594_s0 + $0x48] sm:$0xff]  ;;  %v64_v37 = vld [vmem:[%s1594_s0 + $0x50] sm:$0xff] }
  0x2e   :  { %673 = vmatprep.subr.bf16.mxu1 %v1122_v16  ;;  %v90_v33 = vpack.c.bf16 %v63_v31, %v62_v30  ;;  %v1137_v34 = vld [vmem:[#allocation5 + $0x74] ss:$8 sps:$4 sm:$0xff]   ;;  %v1139_v35 = vld [vmem:[#allocation5 + $0x70] ss:$8 sps:$4 sm:$0xff]   ;;  %v1140_v36 = vld [vmem:[#allocation5 + $0x84] ss:$8 sps:$4 sm:$0xff]  }
  0x2f   :  { %v65_v38 = vld [vmem:[%s1594_s0 + $0x58] sm:$0xff]  ;;  %v1142_v39 = vld [vmem:[#allocation5 + $0x80] ss:$8 sps:$4 sm:$0xff]   ;;  %v1146_v43 = vld [vmem:[#allocation5 + $0xa4] ss:$8 sps:$4 sm:$0xff]  }
  0x30   :  { %v91_v40 = vpack.c.bf16 %v65_v38, %v64_v37  ;;  %v1143_v41 = vld [vmem:[#allocation5 + $0x94] ss:$8 sps:$4 sm:$0xff]   ;;  %v1145_v42 = vld [vmem:[#allocation5 + $0x90] ss:$8 sps:$4 sm:$0xff]   ;;  %v67_v45 = vld [vmem:[%s1594_s0 + $0x68] sm:$0xff] }
  0x31   :  { %674 = vmatpush1.bf16.msra.mxu1 %v1124_v18  ;;  %v66_v44 = vld [vmem:[%s1594_s0 + $0x60] sm:$0xff]  ;;  %v1148_v46 = vld [vmem:[#allocation5 + $0xa0] ss:$8 sps:$4 sm:$0xff]   ;;  %v1152_v50 = vld [vmem:[#allocation5 + $0xc4] ss:$8 sps:$4 sm:$0xff]  }
  0x32   :  { %675 = vmatprep.subr.bf16.mxu1 %v1125_v20  ;;  %v92_v47 = vpack.c.bf16 %v67_v45, %v66_v44  ;;  %v1149_v48 = vld [vmem:[#allocation5 + $0xb4] ss:$8 sps:$4 sm:$0xff]   ;;  %v1151_v49 = vld [vmem:[#allocation5 + $0xb0] ss:$8 sps:$4 sm:$0xff]   ;;  %v68_v51 = vld [vmem:[%s1594_s0 + $0x70] sm:$0xff] }
  0x33   :  { %v69_v52 = vld [vmem:[%s1594_s0 + $0x78] sm:$0xff]  ;;  %v1154_v53 = vld [vmem:[#allocation5 + $0xc0] ss:$8 sps:$4 sm:$0xff]   ;;  %v70_v56 = vld [vmem:[%s1594_s0 + $0x80] sm:$0xff] }
  0x34   :  { %1060 = vmatmul.mubr.msk.bf16.gmra.mrb[4].mxu0 %vm120_vm1, %v87_v10  ;;  %v93_v54 = vpack.c.bf16 %v69_v52, %v68_v51  ;;  %v1155_v55 = vld [vmem:[#allocation5 + $0xd4] ss:$8 sps:$4 sm:$0xff]   ;;  %v71_v57 = vld [vmem:[%s1594_s0 + $0x88] sm:$0xff]  ;;  %v72_v59 = vld [vmem:[%s1594_s0 + $0x90] sm:$0xff] }
  0x35   :  { %228 = vmatprep.mubr.bf16.mxu0 %v1216_v0  ;;  %676 = vmatpush1.bf16.msra.mxu1 %v1127_v22  ;;  %v94_v58 = vpack.c.bf16 %v71_v57, %v70_v56  ;;  %v73_v60 = vld [vmem:[%s1594_s0 + $0x98] sm:$0xff]  ;;  %v74_v62 = vld [vmem:[%s1594_s0 + $0xa0] sm:$0xff]  ;;  %v75_v63 = vld [vmem:[%s1594_s0 + $0xa8] sm:$0xff]  ;;  %v105_v22 = vlaneseq }
  0x36   :  { %677 = vmatprep.subr.bf16.mxu1 %v1128_v23  ;;  %v95_v61 = vpack.c.bf16 %v73_v60, %v72_v59  ;;  %v96_v1 = vpack.c.bf16 %v75_v63, %v74_v62  ;;  %v76_v2 = vld [vmem:[%s1594_s0 + $0xb0] sm:$0xff]  ;;  %v77_v3 = vld [vmem:[%s1594_s0 + $0xb8] sm:$0xff]  ;;  %v78_v9 = vld [vmem:[%s1594_s0 + $0xc0] sm:$0xff] }
  0x37   :  { %v1157_v4 = vld [vmem:[#allocation5 + $0xd0] ss:$8 sps:$4 sm:$0xff]   ;;  %v97_v5 = vpack.c.bf16 %v77_v3, %v76_v2  ;;  %v1158_v6 = vld [vmem:[#allocation5 + $0xe4] ss:$8 sps:$4 sm:$0xff]   ;;  %v1160_v7 = vld [vmem:[#allocation5 + $0xe0] ss:$8 sps:$4 sm:$0xff]  }
  0x38   :  { %v1161_v8 = vld [vmem:[#allocation5 + $0xf4] ss:$8 sps:$4 sm:$0xff]   ;;  %v79_v10 = vld [vmem:[%s1594_s0 + $0xc8] sm:$0xff]  ;;  %v1163_v11 = vld [vmem:[#allocation5 + $0xf0] ss:$8 sps:$4 sm:$0xff]   ;;  %v1418_v23 = vshrl.u32 %v105_v22, 7 }
  0x39   :  { %678 = vmatpush1.bf16.msra.mxu1 %v1130_v25  ;;  %v98_v12 = vpack.c.bf16 %v79_v10, %v78_v9  ;;  %v80_v13 = vld [vmem:[%s1594_s0 + $0xd0] sm:$0xff]  ;;  %v81_v14 = vld [vmem:[%s1594_s0 + $0xd8] sm:$0xff]  ;;  %v82_v16 = vld [vmem:[%s1594_s0 + $0xe0] sm:$0xff]  ;;  %vm1047_vm2 = vcmp.lt.s32.totalorder %v105_v22, 256 }
  0x3a   :  { %679 = vmatprep.subr.bf16.mxu1 %v1131_v27  ;;  %v99_v15 = vpack.c.bf16 %v81_v14, %v80_v13  ;;  %v83_v17 = vld [vmem:[%s1594_s0 + $0xe8] sm:$0xff]  ;;  %v85_v20 = vld [vmem:[%s1594_s0 + $0xf8] sm:$0xff]  ;;  %v107_v24 = vsub.s32 0, %v1418_v23  ;;  %v111_v25 = vsub.s32 1, %v1418_v23 }
  0x3b   :  { %v100_v18 = vpack.c.bf16 %v83_v17, %v82_v16 }
  0x3c   :  { %1061 = vmatmul.mubr.msk.bf16.gmra.mrb[8].mxu0 %vm120_vm1, %v88_v19  ;;  %v84_v19 = vld [vmem:[%s1594_s0 + $0xf0] sm:$0xff] }
  0x3d   :  { %238 = vmatprep.mubr.bf16.mxu0 %v1216_v0  ;;  %680 = vmatpush1.bf16.msra.mxu1 %v1133_v28  ;;  %v101_v21 = vpack.c.bf16 %v85_v20, %v84_v19 }
  0x3e   :  { %681 = vmatprep.subr.bf16.mxu1 %v1134_v29 }
  0x41   :  { %682 = vmatpush1.bf16.msra.mxu1 %v1136_v32 }
  0x42   :  { %683 = vmatprep.subr.bf16.mxu1 %v1137_v34 }
  0x44   :  { %1062 = vmatmul.mubr.msk.bf16.gmra.mrb[12].mxu0 %vm120_vm1, %v89_v26 }
  0x45   :  { %248 = vmatprep.mubr.bf16.mxu0 %v1216_v0  ;;  %684 = vmatpush1.bf16.msra.mxu1 %v1139_v35 }
  0x46   :  { %685 = vmatprep.subr.bf16.mxu1 %v1140_v36 }
  0x49   :  { %686 = vmatpush1.bf16.msra.mxu1 %v1142_v39 }
  0x4a   :  { %687 = vmatprep.subr.bf16.mxu1 %v1143_v41 }
  0x4c   :  { %1063 = vmatmul.mubr.msk.bf16.gmra.mrb[16].mxu0 %vm120_vm1, %v90_v33 }
  0x4d   :  { %258 = vmatprep.mubr.bf16.mxu0 %v1216_v0  ;;  %688 = vmatpush1.bf16.msra.mxu1 %v1145_v42 }
  0x4e   :  { %689 = vmatprep.subr.bf16.mxu1 %v1146_v43 }
  0x51   :  { %690 = vmatpush1.bf16.msra.mxu1 %v1148_v46 }
  0x52   :  { %691 = vmatprep.subr.bf16.mxu1 %v1149_v48 }
  0x54   :  { %1064 = vmatmul.mubr.msk.bf16.gmra.mrb[20].mxu0 %vm120_vm1, %v91_v40 }
  0x55   :  { %268 = vmatprep.mubr.bf16.mxu0 %v1216_v0  ;;  %692 = vmatpush1.bf16.msra.mxu1 %v1151_v49 }
  0x56   :  { %693 = vmatprep.subr.bf16.mxu1 %v1152_v50 }
  0x59   :  { %694 = vmatpush1.bf16.msra.mxu1 %v1154_v53 }
  0x5a   :  { %695 = vmatprep.subr.bf16.mxu1 %v1155_v55 }
  0x5c   :  { %1065 = vmatmul.mubr.msk.bf16.gmra.mrb[24].mxu0 %vm120_vm1, %v92_v47 }
  0x5d   :  { %278 = vmatprep.mubr.bf16.mxu0 %v1216_v0  ;;  %696 = vmatpush1.bf16.msra.mxu1 %v1157_v4 }
  0x5e   :  { %697 = vmatprep.subr.bf16.mxu1 %v1158_v6 }
  0x61   :  { %698 = vmatpush1.bf16.msra.mxu1 %v1160_v7 }
  0x62   :  { %699 = vmatprep.subr.bf16.mxu1 %v1161_v8 }
  0x64   :  { %1066 = vmatmul.mubr.msk.bf16.gmra.mrb[28].mxu0 %vm120_vm1, %v93_v54 }
  0x65   :  { %288 = vmatprep.mubr.bf16.mxu0 %v1216_v0  ;;  %700 = vmatpush1.bf16.msra.mxu1 %v1163_v11 }
  0x6c   :  { %1067 = vmatmul.mubr.msk.bf16.gmra.mrb[32].mxu0 %vm120_vm1, %v94_v58 }
  0x6d   :  { %298 = vmatprep.mubr.bf16.mxu0 %v1216_v0 }
  0x74   :  { %1068 = vmatmul.mubr.msk.bf16.gmra.mrb[36].mxu0 %vm120_vm1, %v95_v61 }
  0x75   :  { %308 = vmatprep.mubr.bf16.mxu0 %v1216_v0 }
  0x7c   :  { %1069 = vmatmul.mubr.msk.bf16.gmra.mrb[40].mxu0 %vm120_vm1, %v96_v1 }
  0x7d   :  { %318 = vmatprep.mubr.bf16.mxu0 %v1216_v0 }
  0x84   :  { %1070 = vmatmul.mubr.msk.bf16.gmra.mrb[44].mxu0 %vm120_vm1, %v97_v5 }
  0x85   :  { %328 = vmatprep.mubr.bf16.mxu0 %v1216_v0 }
  0x8c   :  { %1071 = vmatmul.mubr.msk.bf16.gmra.mrb[48].mxu0 %vm120_vm1, %v98_v12 }
  0x8d   :  { %338 = vmatprep.mubr.bf16.mxu0 %v1216_v0 }
  0x94   :  { %1072 = vmatmul.mubr.msk.bf16.gmra.mrb[52].mxu0 %vm120_vm1, %v99_v15 }
  0x95   :  { %348 = vmatprep.mubr.bf16.mxu0 %v1216_v0 }
  0x9c   :  { %1073 = vmatmul.mubr.msk.bf16.gmra.mrb[56].mxu0 %vm120_vm1, %v100_v18 }
  0x9d   :  { %358 = vmatprep.mubr.bf16.mxu0 %v1216_v0  ;;  %v103_v0 = vld [vmem:[%s1596_s2] sm:$0x3] }
  0x9e   :  { %v1427_v26 = vrot.slane %v103_v0, %v107_v24  ;;  %v1431_v27 = vrot.slane %v103_v0, %v111_v25 }
  0xa4   :  { %1074 = vmatmul.mubr.msk.bf16.gmra.mrb[60].mxu0 %vm120_vm1, %v101_v21 }
  0xff   :  { %v210_v28 = vpop.f32.mrb[0].mxu0 }
 0x100   :  { %v211_v29 = vadd.f32 %v210_v28, %v1427_v26  ;;  %v212_v30 = vpop.f32.mrb[1].mxu0 }
 0x101   :  { %v213_v31 = vadd.f32 %v212_v30, %v1431_v27  ;;  %v214_v32 = vpop.f32.mrb[2].mxu0 }
 0x102   :  { %v215_v33 = vadd.f32 %v214_v32, %v1427_v26  ;;  %v216_v34 = vpop.f32.mrb[3].mxu0  ;;  %v369_v36 = vmax.f32 %v211_v29, 0.0 }
 0x103   :  { %v217_v35 = vadd.f32 %v216_v34, %v1431_v27  ;;  %v370_v38 = vmax.f32 %v213_v31, 0.0 }
 0x104   :  { %v371_v37 = vmax.f32 %v215_v33, 0.0 }
 0x105   :  { %v372_v39 = vmax.f32 %v217_v35, 0.0 }
 0x106   :  { %v433_v40 = vpack.c.bf16 %v371_v37, %v369_v36 }
 0x107   :  { %v220_v41 = vpop.f32.mrb[4].mxu0  ;;  %v434_v42 = vpack.c.bf16 %v372_v39, %v370_v38 }
 0x108   :  { %v221_v43 = vadd.f32 %v220_v41, %v1427_v26  ;;  %v222_v44 = vpop.f32.mrb[5].mxu0 }
 0x109   :  { %v223_v45 = vadd.f32 %v222_v44, %v1431_v27  ;;  %v224_v46 = vpop.f32.mrb[6].mxu0  ;;  %701 = vmatprep.mubr.bf16.mxu1 %v434_v42 }
 0x10a   :  { %v225_v47 = vadd.f32 %v224_v46, %v1427_v26  ;;  %v226_v48 = vpop.f32.mrb[7].mxu0  ;;  %702 = vmatmul.mubr.bf16.vlgmr.msra.gmra.mrb[0].mxu1 %v433_v40  ;;  %v373_v50 = vmax.f32 %v221_v43, 0.0 }
 0x10b   :  { %v227_v49 = vadd.f32 %v226_v48, %v1431_v27  ;;  %v374_v52 = vmax.f32 %v223_v45, 0.0 }
 0x10c   :  { %v375_v51 = vmax.f32 %v225_v47, 0.0 }
 0x10d   :  { %v376_v53 = vmax.f32 %v227_v49, 0.0 }
 0x10e   :  { %v435_v54 = vpack.c.bf16 %v375_v51, %v373_v50 }
 0x10f   :  { %v436_v55 = vpack.c.bf16 %v376_v53, %v374_v52  ;;  %v230_v56 = vpop.f32.mrb[8].mxu0 }
 0x110   :  { %v231_v57 = vadd.f32 %v230_v56, %v1427_v26  ;;  %v232_v58 = vpop.f32.mrb[9].mxu0 }
 0x111   :  { %v233_v59 = vadd.f32 %v232_v58, %v1431_v27  ;;  %v234_v60 = vpop.f32.mrb[10].mxu0  ;;  %711 = vmatprep.mubr.bf16.mxu1 %v436_v55 }
 0x112   :  { %v235_v61 = vadd.f32 %v234_v60, %v1427_v26  ;;  %v236_v62 = vpop.f32.mrb[11].mxu0  ;;  %712 = vmatmul.mubr.bf16.gmra.mrb[4].mxu1 %v435_v54  ;;  %v377_v1 = vmax.f32 %v231_v57, 0.0 }
 0x113   :  { %v237_v63 = vadd.f32 %v236_v62, %v1431_v27  ;;  %v378_v3 = vmax.f32 %v233_v59, 0.0 }
 0x114   :  { %v379_v2 = vmax.f32 %v235_v61, 0.0 }
 0x115   :  { %v380_v4 = vmax.f32 %v237_v63, 0.0 }
 0x116   :  { %v437_v5 = vpack.c.bf16 %v379_v2, %v377_v1 }
 0x117   :  { %v438_v6 = vpack.c.bf16 %v380_v4, %v378_v3  ;;  %v240_v7 = vpop.f32.mrb[12].mxu0 }
 0x118   :  { %v241_v8 = vadd.f32 %v240_v7, %v1427_v26  ;;  %v242_v9 = vpop.f32.mrb[13].mxu0 }
 0x119   :  { %v243_v10 = vadd.f32 %v242_v9, %v1431_v27  ;;  %v244_v11 = vpop.f32.mrb[14].mxu0  ;;  %721 = vmatprep.mubr.bf16.mxu1 %v438_v6 }
 0x11a   :  { %v245_v12 = vadd.f32 %v244_v11, %v1427_v26  ;;  %v246_v13 = vpop.f32.mrb[15].mxu0  ;;  %722 = vmatmul.mubr.bf16.gmra.mrb[8].mxu1 %v437_v5  ;;  %v381_v15 = vmax.f32 %v241_v8, 0.0 }
 0x11b   :  { %v247_v14 = vadd.f32 %v246_v13, %v1431_v27  ;;  %v382_v17 = vmax.f32 %v243_v10, 0.0 }
 0x11c   :  { %v383_v16 = vmax.f32 %v245_v12, 0.0 }
 0x11d   :  { %v384_v18 = vmax.f32 %v247_v14, 0.0 }
 0x11e   :  { %v439_v19 = vpack.c.bf16 %v383_v16, %v381_v15 }
 0x11f   :  { %v440_v20 = vpack.c.bf16 %v384_v18, %v382_v17  ;;  %v250_v21 = vpop.f32.mrb[16].mxu0 }
 0x120   :  { %v251_v0 = vadd.f32 %v250_v21, %v1427_v26  ;;  %v252_v28 = vpop.f32.mrb[17].mxu0 }
 0x121   :  { %v253_v29 = vadd.f32 %v252_v28, %v1431_v27  ;;  %v254_v30 = vpop.f32.mrb[18].mxu0  ;;  %731 = vmatprep.mubr.bf16.mxu1 %v440_v20 }
 0x122   :  { %v255_v31 = vadd.f32 %v254_v30, %v1427_v26  ;;  %v256_v32 = vpop.f32.mrb[19].mxu0  ;;  %732 = vmatmul.mubr.bf16.gmra.mrb[12].mxu1 %v439_v19  ;;  %v385_v34 = vmax.f32 %v251_v0, 0.0 }
 0x123   :  { %v257_v33 = vadd.f32 %v256_v32, %v1431_v27  ;;  %v386_v36 = vmax.f32 %v253_v29, 0.0 }
 0x124   :  { %v387_v35 = vmax.f32 %v255_v31, 0.0 }
 0x125   :  { %v388_v37 = vmax.f32 %v257_v33, 0.0 }
 0x126   :  { %v441_v38 = vpack.c.bf16 %v387_v35, %v385_v34 }
 0x127   :  { %v442_v39 = vpack.c.bf16 %v388_v37, %v386_v36  ;;  %v260_v40 = vpop.f32.mrb[20].mxu0 }
 0x128   :  { %v261_v41 = vadd.f32 %v260_v40, %v1427_v26  ;;  %v262_v42 = vpop.f32.mrb[21].mxu0 }
 0x129   :  { %v263_v43 = vadd.f32 %v262_v42, %v1431_v27  ;;  %v264_v44 = vpop.f32.mrb[22].mxu0  ;;  %741 = vmatprep.mubr.bf16.mxu1 %v442_v39 }
 0x12a   :  { %v265_v45 = vadd.f32 %v264_v44, %v1427_v26  ;;  %v266_v46 = vpop.f32.mrb[23].mxu0  ;;  %742 = vmatmul.mubr.bf16.gmra.mrb[16].mxu1 %v441_v38  ;;  %v389_v48 = vmax.f32 %v261_v41, 0.0 }
 0x12b   :  { %v267_v47 = vadd.f32 %v266_v46, %v1431_v27  ;;  %v390_v50 = vmax.f32 %v263_v43, 0.0 }
 0x12c   :  { %v391_v49 = vmax.f32 %v265_v45, 0.0 }
 0x12d   :  { %v392_v51 = vmax.f32 %v267_v47, 0.0 }
 0x12e   :  { %v443_v52 = vpack.c.bf16 %v391_v49, %v389_v48 }
 0x12f   :  { %v444_v53 = vpack.c.bf16 %v392_v51, %v390_v50  ;;  %v270_v54 = vpop.f32.mrb[24].mxu0 }
 0x130   :  { %v271_v55 = vadd.f32 %v270_v54, %v1427_v26  ;;  %v272_v56 = vpop.f32.mrb[25].mxu0 }
 0x131   :  { %v273_v57 = vadd.f32 %v272_v56, %v1431_v27  ;;  %v274_v58 = vpop.f32.mrb[26].mxu0  ;;  %751 = vmatprep.mubr.bf16.mxu1 %v444_v53 }
 0x132   :  { %v275_v59 = vadd.f32 %v274_v58, %v1427_v26  ;;  %v276_v60 = vpop.f32.mrb[27].mxu0  ;;  %752 = vmatmul.mubr.bf16.gmra.mrb[20].mxu1 %v443_v52  ;;  %v393_v62 = vmax.f32 %v271_v55, 0.0 }
 0x133   :  { %v277_v61 = vadd.f32 %v276_v60, %v1431_v27  ;;  %v394_v1 = vmax.f32 %v273_v57, 0.0 }
 0x134   :  { %v395_v63 = vmax.f32 %v275_v59, 0.0 }
 0x135   :  { %v396_v2 = vmax.f32 %v277_v61, 0.0 }
 0x136   :  { %v445_v3 = vpack.c.bf16 %v395_v63, %v393_v62 }
 0x137   :  { %v446_v4 = vpack.c.bf16 %v396_v2, %v394_v1  ;;  %v280_v5 = vpop.f32.mrb[28].mxu0 }
 0x138   :  { %v281_v6 = vadd.f32 %v280_v5, %v1427_v26  ;;  %v282_v7 = vpop.f32.mrb[29].mxu0 }
 0x139   :  { %v283_v8 = vadd.f32 %v282_v7, %v1431_v27  ;;  %v284_v9 = vpop.f32.mrb[30].mxu0  ;;  %761 = vmatprep.mubr.bf16.mxu1 %v446_v4 }
 0x13a   :  { %v285_v10 = vadd.f32 %v284_v9, %v1427_v26  ;;  %v286_v11 = vpop.f32.mrb[31].mxu0  ;;  %762 = vmatmul.mubr.bf16.gmra.mrb[24].mxu1 %v445_v3  ;;  %v397_v13 = vmax.f32 %v281_v6, 0.0 }
 0x13b   :  { %v287_v12 = vadd.f32 %v286_v11, %v1431_v27  ;;  %v398_v15 = vmax.f32 %v283_v8, 0.0 }
 0x13c   :  { %v399_v14 = vmax.f32 %v285_v10, 0.0 }
 0x13d   :  { %v400_v16 = vmax.f32 %v287_v12, 0.0 }
 0x13e   :  { %v447_v17 = vpack.c.bf16 %v399_v14, %v397_v13 }
 0x13f   :  { %v448_v18 = vpack.c.bf16 %v400_v16, %v398_v15  ;;  %v290_v19 = vpop.f32.mrb[32].mxu0 }
 0x140   :  { %v291_v20 = vadd.f32 %v290_v19, %v1427_v26  ;;  %v292_v21 = vpop.f32.mrb[33].mxu0 }
 0x141   :  { %v293_v0 = vadd.f32 %v292_v21, %v1431_v27  ;;  %v294_v28 = vpop.f32.mrb[34].mxu0  ;;  %771 = vmatprep.mubr.bf16.mxu1 %v448_v18 }
 0x142   :  { %v295_v29 = vadd.f32 %v294_v28, %v1427_v26  ;;  %v296_v30 = vpop.f32.mrb[35].mxu0  ;;  %772 = vmatmul.mubr.bf16.gmra.mrb[28].mxu1 %v447_v17  ;;  %v401_v32 = vmax.f32 %v291_v20, 0.0 }
 0x143   :  { %v297_v31 = vadd.f32 %v296_v30, %v1431_v27  ;;  %v402_v34 = vmax.f32 %v293_v0, 0.0 }
 0x144   :  { %v403_v33 = vmax.f32 %v295_v29, 0.0 }
 0x145   :  { %v404_v35 = vmax.f32 %v297_v31, 0.0 }
 0x146   :  { %v449_v36 = vpack.c.bf16 %v403_v33, %v401_v32 }
 0x147   :  { %v450_v37 = vpack.c.bf16 %v404_v35, %v402_v34  ;;  %v300_v38 = vpop.f32.mrb[36].mxu0 }
 0x148   :  { %v301_v39 = vadd.f32 %v300_v38, %v1427_v26  ;;  %v302_v40 = vpop.f32.mrb[37].mxu0 }
 0x149   :  { %v303_v41 = vadd.f32 %v302_v40, %v1431_v27  ;;  %v304_v42 = vpop.f32.mrb[38].mxu0  ;;  %781 = vmatprep.mubr.bf16.mxu1 %v450_v37 }
 0x14a   :  { %v305_v43 = vadd.f32 %v304_v42, %v1427_v26  ;;  %v306_v44 = vpop.f32.mrb[39].mxu0  ;;  %782 = vmatmul.mubr.bf16.gmra.mrb[32].mxu1 %v449_v36  ;;  %v405_v46 = vmax.f32 %v301_v39, 0.0 }
 0x14b   :  { %v307_v45 = vadd.f32 %v306_v44, %v1431_v27  ;;  %v406_v48 = vmax.f32 %v303_v41, 0.0 }
 0x14c   :  { %v407_v47 = vmax.f32 %v305_v43, 0.0 }
 0x14d   :  { %v408_v49 = vmax.f32 %v307_v45, 0.0 }
 0x14e   :  { %v451_v50 = vpack.c.bf16 %v407_v47, %v405_v46 }
 0x14f   :  { %v452_v51 = vpack.c.bf16 %v408_v49, %v406_v48  ;;  %v310_v52 = vpop.f32.mrb[40].mxu0 }
 0x150   :  { %v311_v53 = vadd.f32 %v310_v52, %v1427_v26  ;;  %v312_v54 = vpop.f32.mrb[41].mxu0 }
 0x151   :  { %v313_v55 = vadd.f32 %v312_v54, %v1431_v27  ;;  %v314_v56 = vpop.f32.mrb[42].mxu0  ;;  %791 = vmatprep.mubr.bf16.mxu1 %v452_v51 }
 0x152   :  { %v315_v57 = vadd.f32 %v314_v56, %v1427_v26  ;;  %v316_v58 = vpop.f32.mrb[43].mxu0  ;;  %792 = vmatmul.mubr.bf16.gmra.mrb[36].mxu1 %v451_v50  ;;  %v409_v60 = vmax.f32 %v311_v53, 0.0 }
 0x153   :  { %v317_v59 = vadd.f32 %v316_v58, %v1431_v27  ;;  %v410_v62 = vmax.f32 %v313_v55, 0.0 }
 0x154   :  { %v411_v61 = vmax.f32 %v315_v57, 0.0 }
 0x155   :  { %v412_v63 = vmax.f32 %v317_v59, 0.0 }
 0x156   :  { %v453_v1 = vpack.c.bf16 %v411_v61, %v409_v60 }
 0x157   :  { %v454_v2 = vpack.c.bf16 %v412_v63, %v410_v62  ;;  %v320_v3 = vpop.f32.mrb[44].mxu0 }
 0x158   :  { %v321_v4 = vadd.f32 %v320_v3, %v1427_v26  ;;  %v322_v5 = vpop.f32.mrb[45].mxu0 }
 0x159   :  { %v323_v6 = vadd.f32 %v322_v5, %v1431_v27  ;;  %v324_v7 = vpop.f32.mrb[46].mxu0  ;;  %801 = vmatprep.mubr.bf16.mxu1 %v454_v2 }
 0x15a   :  { %v325_v8 = vadd.f32 %v324_v7, %v1427_v26  ;;  %v326_v9 = vpop.f32.mrb[47].mxu0  ;;  %802 = vmatmul.mubr.bf16.gmra.mrb[40].mxu1 %v453_v1  ;;  %v413_v11 = vmax.f32 %v321_v4, 0.0 }
 0x15b   :  { %v327_v10 = vadd.f32 %v326_v9, %v1431_v27  ;;  %v414_v13 = vmax.f32 %v323_v6, 0.0 }
 0x15c   :  { %v415_v12 = vmax.f32 %v325_v8, 0.0 }
 0x15d   :  { %v416_v14 = vmax.f32 %v327_v10, 0.0 }
 0x15e   :  { %v455_v15 = vpack.c.bf16 %v415_v12, %v413_v11 }
 0x15f   :  { %v456_v16 = vpack.c.bf16 %v416_v14, %v414_v13  ;;  %v330_v17 = vpop.f32.mrb[48].mxu0 }
 0x160   :  { %v331_v18 = vadd.f32 %v330_v17, %v1427_v26  ;;  %v332_v19 = vpop.f32.mrb[49].mxu0 }
 0x161   :  { %v333_v20 = vadd.f32 %v332_v19, %v1431_v27  ;;  %v334_v21 = vpop.f32.mrb[50].mxu0  ;;  %811 = vmatprep.mubr.bf16.mxu1 %v456_v16  ;;  %v1217_v19 = vmov 1966171168  }
 0x162   :  { %v335_v0 = vadd.f32 %v334_v21, %v1427_v26  ;;  %v336_v28 = vpop.f32.mrb[51].mxu0  ;;  %812 = vmatmul.mubr.bf16.gmra.mrb[44].mxu1 %v455_v15  ;;  %v417_v30 = vmax.f32 %v331_v18, 0.0  ;;  %v497_v15 = vld [vmem:[%s1598_s4] sm:$0x3] }
 0x163   :  { %v337_v29 = vadd.f32 %v336_v28, %v1431_v27  ;;  %v418_v32 = vmax.f32 %v333_v20, 0.0  ;;  %v1502_v16 = vrot.slane %v497_v15, %v107_v24  ;;  %v971_v20 = vunpack.c.l.s4 %v1217_v19  ;;  %v1514_v24 = vld.sshfl [vmem:[%s1599_s5] sm:$0x11 pattern:$0x75316420] }
 0x164   :  { %v419_v31 = vmax.f32 %v335_v0, 0.0 }
 0x165   :  { %v420_v33 = vmax.f32 %v337_v29, 0.0 }
 0x166   :  { %v457_v34 = vpack.c.bf16 %v419_v31, %v417_v30  ;;  %v972_v30 = vunpack.c.0.s8 %v971_v20  ;;  %v969_v31 = vcombine.high %v1514_v24, %v1514_v24 }
 0x167   :  { %v458_v35 = vpack.c.bf16 %v420_v33, %v418_v32  ;;  %v340_v36 = vpop.f32.mrb[52].mxu0 }
 0x168   :  { %v341_v37 = vadd.f32 %v340_v36, %v1427_v26  ;;  %v342_v38 = vpop.f32.mrb[53].mxu0 }
 0x169   :  { %v343_v39 = vadd.f32 %v342_v38, %v1431_v27  ;;  %v344_v40 = vpop.f32.mrb[54].mxu0  ;;  %821 = vmatprep.mubr.bf16.mxu1 %v458_v35 }
 0x16a   :  { %v345_v41 = vadd.f32 %v344_v40, %v1427_v26  ;;  %v346_v42 = vpop.f32.mrb[55].mxu0  ;;  %822 = vmatmul.mubr.bf16.gmra.mrb[48].mxu1 %v457_v34  ;;  %v421_v44 = vmax.f32 %v341_v37, 0.0  ;;  %v1520_v34 = vsub.s32 %v972_v30, %v1418_v23 }
 0x16b   :  { %v347_v43 = vadd.f32 %v346_v42, %v1431_v27  ;;  %v422_v46 = vmax.f32 %v343_v39, 0.0 }
 0x16c   :  { %v423_v45 = vmax.f32 %v345_v41, 0.0  ;;  %v983_v38 = vrot.slane %v969_v31, %v1520_v34 }
 0x16d   :  { %v424_v47 = vmax.f32 %v347_v43, 0.0 }
 0x16e   :  { %v459_v48 = vpack.c.bf16 %v423_v45, %v421_v44  ;;  %1018 = vmatprep.mubr.bf16.mxu0 %v983_v38 }
 0x16f   :  { %v460_v49 = vpack.c.bf16 %v424_v47, %v422_v46  ;;  %v350_v50 = vpop.f32.mrb[56].mxu0 }
 0x170   :  { %v351_v51 = vadd.f32 %v350_v50, %v1427_v26  ;;  %v352_v52 = vpop.f32.mrb[57].mxu0 }
 0x171   :  { %v353_v53 = vadd.f32 %v352_v52, %v1431_v27  ;;  %v354_v54 = vpop.f32.mrb[58].mxu0  ;;  %831 = vmatprep.mubr.bf16.mxu1 %v460_v49 }
 0x172   :  { %v355_v55 = vadd.f32 %v354_v54, %v1427_v26  ;;  %v356_v56 = vpop.f32.mrb[59].mxu0  ;;  %832 = vmatmul.mubr.bf16.gmra.mrb[52].mxu1 %v459_v48  ;;  %v425_v58 = vmax.f32 %v351_v51, 0.0 }
 0x173   :  { %v357_v57 = vadd.f32 %v356_v56, %v1431_v27  ;;  %v426_v60 = vmax.f32 %v353_v53, 0.0 }
 0x174   :  { %v427_v59 = vmax.f32 %v355_v55, 0.0 }
 0x175   :  { %v428_v61 = vmax.f32 %v357_v57, 0.0 }
 0x176   :  { %v461_v62 = vpack.c.bf16 %v427_v59, %v425_v58 }
 0x177   :  { %v462_v63 = vpack.c.bf16 %v428_v61, %v426_v60  ;;  %v360_v1 = vpop.f32.mrb[60].mxu0 }
 0x178   :  { %v361_v2 = vadd.f32 %v360_v1, %v1427_v26  ;;  %v362_v3 = vpop.f32.mrb[61].mxu0 }
 0x179   :  { %v363_v4 = vadd.f32 %v362_v3, %v1431_v27  ;;  %v364_v5 = vpop.f32.mrb[62].mxu0  ;;  %841 = vmatprep.mubr.bf16.mxu1 %v462_v63 }
 0x17a   :  { %v365_v6 = vadd.f32 %v364_v5, %v1427_v26  ;;  %v366_v7 = vpop.f32.mrb[63].mxu0  ;;  %842 = vmatmul.mubr.bf16.gmra.mrb[56].mxu1 %v461_v62  ;;  %v429_v9 = vmax.f32 %v361_v2, 0.0  ;;  %v1506_v26 = vrot.slane %v497_v15, %v111_v25 }
 0x17b   :  { %v367_v8 = vadd.f32 %v366_v7, %v1431_v27  ;;  %v430_v11 = vmax.f32 %v363_v4, 0.0 }
 0x17c   :  { %v431_v10 = vmax.f32 %v365_v6, 0.0 }
 0x17d   :  { %v432_v12 = vmax.f32 %v367_v8, 0.0 }
 0x17e   :  { %v463_v13 = vpack.c.bf16 %v431_v10, %v429_v9 }
 0x17f   :  { %v464_v14 = vpack.c.bf16 %v432_v12, %v430_v11 }
 0x181   :  { %851 = vmatprep.mubr.bf16.mxu1 %v464_v14 }
 0x182   :  { %852 = vmatmul.mubr.bf16.gmra.mrb[60].mxu1 %v463_v13 }
 0x1dd   :  { %v703_v27 = vpop.f32.mrb[0].mxu1 }
 0x1de   :  { %v704_v17 = vadd.f32 %v703_v27, %v1502_v16  ;;  %v705_v18 = vpop.f32.mrb[1].mxu1 }
 0x1df   :  { %v706_v21 = vadd.f32 %v705_v18, %v1506_v26  ;;  %v707_v0 = vpop.f32.mrb[2].mxu1 }
 0x1e0   :  { %v708_v28 = vadd.f32 %v707_v0, %v1502_v16  ;;  %v709_v29 = vpop.f32.mrb[3].mxu1  ;;  %v862_v32 = vmax.f32 %v704_v17, 0.0 }
 0x1e1   :  { %v710_v25 = vadd.f32 %v709_v29, %v1506_v26  ;;  %v863_v35 = vmax.f32 %v706_v21, 0.0 }
 0x1e2   :  { %v864_v33 = vmax.f32 %v708_v28, 0.0 }
 0x1e3   :  { %v865_v36 = vmax.f32 %v710_v25, 0.0 }
 0x1e4   :  { %v927_v37 = vpack.c.bf16 %v864_v33, %v862_v32 }
 0x1e5   :  { %v928_v39 = vpack.c.bf16 %v865_v36, %v863_v35  ;;  %v713_v40 = vpop.f32.mrb[4].mxu1 }
 0x1e6   :  { %v714_v41 = vadd.f32 %v713_v40, %v1502_v16  ;;  %v715_v42 = vpop.f32.mrb[5].mxu1 }
 0x1e7   :  { %v716_v43 = vadd.f32 %v715_v42, %v1506_v26  ;;  %v717_v44 = vpop.f32.mrb[6].mxu1  ;;  %986 = vmatprep.subr.bf16.mxu0 %v928_v39 }
 0x1e8   :  { %v718_v45 = vadd.f32 %v717_v44, %v1502_v16  ;;  %v719_v46 = vpop.f32.mrb[7].mxu1  ;;  %987 = vmatpush1.bf16.xpose.msra.mxu0 %v927_v37  ;;  %v866_v47 = vmax.f32 %v714_v41, 0.0 }
 0x1e9   :  { %v720_v23 = vadd.f32 %v719_v46, %v1506_v26  ;;  %v867_v49 = vmax.f32 %v716_v43, 0.0 }
 0x1ea   :  { %v868_v48 = vmax.f32 %v718_v45, 0.0 }
 0x1eb   :  { %v869_v50 = vmax.f32 %v720_v23, 0.0 }
 0x1ec   :  { %v929_v51 = vpack.c.bf16 %v868_v48, %v866_v47 }
 0x1ed   :  { %v930_v52 = vpack.c.bf16 %v869_v50, %v867_v49  ;;  %v723_v53 = vpop.f32.mrb[8].mxu1 }
 0x1ee   :  { %v724_v54 = vadd.f32 %v723_v53, %v1502_v16  ;;  %v725_v55 = vpop.f32.mrb[9].mxu1 }
 0x1ef   :  { %v726_v56 = vadd.f32 %v725_v55, %v1506_v26  ;;  %v727_v57 = vpop.f32.mrb[10].mxu1  ;;  %988 = vmatprep.subr.bf16.mxu0 %v930_v52 }
 0x1f0   :  { %v728_v58 = vadd.f32 %v727_v57, %v1502_v16  ;;  %v729_v59 = vpop.f32.mrb[11].mxu1  ;;  %989 = vmatpush1.bf16.xpose.msra.mxu0 %v929_v51  ;;  %v870_v61 = vmax.f32 %v724_v54, 0.0 }
 0x1f1   :  { %v730_v60 = vadd.f32 %v729_v59, %v1506_v26  ;;  %v871_v63 = vmax.f32 %v726_v56, 0.0 }
 0x1f2   :  { %v872_v62 = vmax.f32 %v728_v58, 0.0 }
 0x1f3   :  { %v873_v1 = vmax.f32 %v730_v60, 0.0 }
 0x1f4   :  { %v931_v2 = vpack.c.bf16 %v872_v62, %v870_v61 }
 0x1f5   :  { %v932_v3 = vpack.c.bf16 %v873_v1, %v871_v63  ;;  %v733_v4 = vpop.f32.mrb[12].mxu1 }
 0x1f6   :  { %v734_v5 = vadd.f32 %v733_v4, %v1502_v16  ;;  %v735_v6 = vpop.f32.mrb[13].mxu1 }
 0x1f7   :  { %v736_v7 = vadd.f32 %v735_v6, %v1506_v26  ;;  %v737_v8 = vpop.f32.mrb[14].mxu1  ;;  %990 = vmatprep.subr.bf16.mxu0 %v932_v3 }
 0x1f8   :  { %v738_v9 = vadd.f32 %v737_v8, %v1502_v16  ;;  %v739_v10 = vpop.f32.mrb[15].mxu1  ;;  %991 = vmatpush1.bf16.xpose.msra.mxu0 %v931_v2  ;;  %v874_v12 = vmax.f32 %v734_v5, 0.0 }
 0x1f9   :  { %v740_v11 = vadd.f32 %v739_v10, %v1506_v26  ;;  %v875_v14 = vmax.f32 %v736_v7, 0.0 }
 0x1fa   :  { %v876_v13 = vmax.f32 %v738_v9, 0.0 }
 0x1fb   :  { %v877_v15 = vmax.f32 %v740_v11, 0.0 }
 0x1fc   :  { %v933_v27 = vpack.c.bf16 %v876_v13, %v874_v12 }
 0x1fd   :  { %v934_v17 = vpack.c.bf16 %v877_v15, %v875_v14  ;;  %v743_v18 = vpop.f32.mrb[16].mxu1 }
 0x1fe   :  { %v744_v19 = vadd.f32 %v743_v18, %v1502_v16  ;;  %v745_v20 = vpop.f32.mrb[17].mxu1 }
 0x1ff   :  { %v746_v21 = vadd.f32 %v745_v20, %v1506_v26  ;;  %v747_v0 = vpop.f32.mrb[18].mxu1  ;;  %992 = vmatprep.subr.bf16.mxu0 %v934_v17 }
 0x200   :  { %v748_v28 = vadd.f32 %v747_v0, %v1502_v16  ;;  %v749_v29 = vpop.f32.mrb[19].mxu1  ;;  %993 = vmatpush1.bf16.xpose.msra.mxu0 %v933_v27  ;;  %v878_v25 = vmax.f32 %v744_v19, 0.0 }
 0x201   :  { %v750_v30 = vadd.f32 %v749_v29, %v1506_v26  ;;  %v879_v32 = vmax.f32 %v746_v21, 0.0 }
 0x202   :  { %v880_v31 = vmax.f32 %v748_v28, 0.0 }
 0x203   :  { %v881_v33 = vmax.f32 %v750_v30, 0.0 }
 0x204   :  { %v935_v35 = vpack.c.bf16 %v880_v31, %v878_v25 }
 0x205   :  { %v936_v36 = vpack.c.bf16 %v881_v33, %v879_v32  ;;  %v753_v37 = vpop.f32.mrb[20].mxu1 }
 0x206   :  { %v754_v38 = vadd.f32 %v753_v37, %v1502_v16  ;;  %v755_v39 = vpop.f32.mrb[21].mxu1 }
 0x207   :  { %v756_v40 = vadd.f32 %v755_v39, %v1506_v26  ;;  %v757_v41 = vpop.f32.mrb[22].mxu1  ;;  %994 = vmatprep.subr.bf16.mxu0 %v936_v36 }
 0x208   :  { %v758_v42 = vadd.f32 %v757_v41, %v1502_v16  ;;  %v759_v43 = vpop.f32.mrb[23].mxu1  ;;  %995 = vmatpush1.bf16.xpose.msra.mxu0 %v935_v35  ;;  %v882_v45 = vmax.f32 %v754_v38, 0.0 }
 0x209   :  { %v760_v44 = vadd.f32 %v759_v43, %v1506_v26  ;;  %v883_v23 = vmax.f32 %v756_v40, 0.0 }
 0x20a   :  { %v884_v46 = vmax.f32 %v758_v42, 0.0 }
 0x20b   :  { %v885_v47 = vmax.f32 %v760_v44, 0.0 }
 0x20c   :  { %v937_v48 = vpack.c.bf16 %v884_v46, %v882_v45 }
 0x20d   :  { %v938_v49 = vpack.c.bf16 %v885_v47, %v883_v23  ;;  %v763_v50 = vpop.f32.mrb[24].mxu1 }
 0x20e   :  { %v764_v51 = vadd.f32 %v763_v50, %v1502_v16  ;;  %v765_v52 = vpop.f32.mrb[25].mxu1 }
 0x20f   :  { %v766_v53 = vadd.f32 %v765_v52, %v1506_v26  ;;  %v767_v54 = vpop.f32.mrb[26].mxu1  ;;  %996 = vmatprep.subr.bf16.mxu0 %v938_v49 }
 0x210   :  { %v768_v55 = vadd.f32 %v767_v54, %v1502_v16  ;;  %v769_v56 = vpop.f32.mrb[27].mxu1  ;;  %997 = vmatpush1.bf16.xpose.msra.mxu0 %v937_v48  ;;  %v886_v58 = vmax.f32 %v764_v51, 0.0 }
 0x211   :  { %v770_v57 = vadd.f32 %v769_v56, %v1506_v26  ;;  %v887_v60 = vmax.f32 %v766_v53, 0.0 }
 0x212   :  { %v888_v59 = vmax.f32 %v768_v55, 0.0 }
 0x213   :  { %v889_v61 = vmax.f32 %v770_v57, 0.0 }
 0x214   :  { %v939_v62 = vpack.c.bf16 %v888_v59, %v886_v58 }
 0x215   :  { %v940_v63 = vpack.c.bf16 %v889_v61, %v887_v60  ;;  %v773_v1 = vpop.f32.mrb[28].mxu1 }
 0x216   :  { %v774_v2 = vadd.f32 %v773_v1, %v1502_v16  ;;  %v775_v3 = vpop.f32.mrb[29].mxu1 }
 0x217   :  { %v776_v4 = vadd.f32 %v775_v3, %v1506_v26  ;;  %v777_v5 = vpop.f32.mrb[30].mxu1  ;;  %998 = vmatprep.subr.bf16.mxu0 %v940_v63 }
 0x218   :  { %v778_v6 = vadd.f32 %v777_v5, %v1502_v16  ;;  %v779_v7 = vpop.f32.mrb[31].mxu1  ;;  %999 = vmatpush1.bf16.xpose.msra.mxu0 %v939_v62  ;;  %v890_v9 = vmax.f32 %v774_v2, 0.0 }
 0x219   :  { %v780_v8 = vadd.f32 %v779_v7, %v1506_v26  ;;  %v891_v11 = vmax.f32 %v776_v4, 0.0 }
 0x21a   :  { %v892_v10 = vmax.f32 %v778_v6, 0.0 }
 0x21b   :  { %v893_v12 = vmax.f32 %v780_v8, 0.0 }
 0x21c   :  { %v941_v13 = vpack.c.bf16 %v892_v10, %v890_v9 }
 0x21d   :  { %v942_v14 = vpack.c.bf16 %v893_v12, %v891_v11  ;;  %v783_v15 = vpop.f32.mrb[32].mxu1 }
 0x21e   :  { %v784_v27 = vadd.f32 %v783_v15, %v1502_v16  ;;  %v785_v17 = vpop.f32.mrb[33].mxu1 }
 0x21f   :  { %v786_v18 = vadd.f32 %v785_v17, %v1506_v26  ;;  %v787_v19 = vpop.f32.mrb[34].mxu1  ;;  %1000 = vmatprep.subr.bf16.mxu0 %v942_v14 }
 0x220   :  { %v788_v20 = vadd.f32 %v787_v19, %v1502_v16  ;;  %v789_v21 = vpop.f32.mrb[35].mxu1  ;;  %1001 = vmatpush1.bf16.xpose.msra.mxu0 %v941_v13  ;;  %v894_v28 = vmax.f32 %v784_v27, 0.0 }
 0x221   :  { %v790_v0 = vadd.f32 %v789_v21, %v1506_v26  ;;  %v895_v30 = vmax.f32 %v786_v18, 0.0 }
 0x222   :  { %v896_v29 = vmax.f32 %v788_v20, 0.0 }
 0x223   :  { %v897_v25 = vmax.f32 %v790_v0, 0.0 }
 0x224   :  { %v943_v31 = vpack.c.bf16 %v896_v29, %v894_v28 }
 0x225   :  { %v944_v32 = vpack.c.bf16 %v897_v25, %v895_v30  ;;  %v793_v33 = vpop.f32.mrb[36].mxu1 }
 0x226   :  { %v794_v35 = vadd.f32 %v793_v33, %v1502_v16  ;;  %v795_v36 = vpop.f32.mrb[37].mxu1 }
 0x227   :  { %v796_v37 = vadd.f32 %v795_v36, %v1506_v26  ;;  %v797_v38 = vpop.f32.mrb[38].mxu1  ;;  %1002 = vmatprep.subr.bf16.mxu0 %v944_v32 }
 0x228   :  { %v798_v39 = vadd.f32 %v797_v38, %v1502_v16  ;;  %v799_v40 = vpop.f32.mrb[39].mxu1  ;;  %1003 = vmatpush1.bf16.xpose.msra.mxu0 %v943_v31  ;;  %v898_v42 = vmax.f32 %v794_v35, 0.0 }
 0x229   :  { %v800_v41 = vadd.f32 %v799_v40, %v1506_v26  ;;  %v899_v44 = vmax.f32 %v796_v37, 0.0 }
 0x22a   :  { %v900_v43 = vmax.f32 %v798_v39, 0.0 }
 0x22b   :  { %v901_v45 = vmax.f32 %v800_v41, 0.0 }
 0x22c   :  { %v945_v46 = vpack.c.bf16 %v900_v43, %v898_v42 }
 0x22d   :  { %v946_v23 = vpack.c.bf16 %v901_v45, %v899_v44  ;;  %v803_v47 = vpop.f32.mrb[40].mxu1 }
 0x22e   :  { %v804_v48 = vadd.f32 %v803_v47, %v1502_v16  ;;  %v805_v49 = vpop.f32.mrb[41].mxu1 }
 0x22f   :  { %v806_v50 = vadd.f32 %v805_v49, %v1506_v26  ;;  %v807_v51 = vpop.f32.mrb[42].mxu1  ;;  %1004 = vmatprep.subr.bf16.mxu0 %v946_v23 }
 0x230   :  { %v808_v52 = vadd.f32 %v807_v51, %v1502_v16  ;;  %v809_v53 = vpop.f32.mrb[43].mxu1  ;;  %1005 = vmatpush1.bf16.xpose.msra.mxu0 %v945_v46  ;;  %v902_v55 = vmax.f32 %v804_v48, 0.0 }
 0x231   :  { %v810_v54 = vadd.f32 %v809_v53, %v1506_v26  ;;  %v903_v57 = vmax.f32 %v806_v50, 0.0 }
 0x232   :  { %v904_v56 = vmax.f32 %v808_v52, 0.0 }
 0x233   :  { %v905_v58 = vmax.f32 %v810_v54, 0.0 }
 0x234   :  { %v947_v59 = vpack.c.bf16 %v904_v56, %v902_v55 }
 0x235   :  { %v948_v60 = vpack.c.bf16 %v905_v58, %v903_v57  ;;  %v813_v61 = vpop.f32.mrb[44].mxu1 }
 0x236   :  { %v814_v62 = vadd.f32 %v813_v61, %v1502_v16  ;;  %v815_v63 = vpop.f32.mrb[45].mxu1 }
 0x237   :  { %v816_v1 = vadd.f32 %v815_v63, %v1506_v26  ;;  %v817_v2 = vpop.f32.mrb[46].mxu1  ;;  %1006 = vmatprep.subr.bf16.mxu0 %v948_v60 }
 0x238   :  { %v818_v3 = vadd.f32 %v817_v2, %v1502_v16  ;;  %v819_v4 = vpop.f32.mrb[47].mxu1  ;;  %1007 = vmatpush1.bf16.xpose.msra.mxu0 %v947_v59  ;;  %v906_v6 = vmax.f32 %v814_v62, 0.0 }
 0x239   :  { %v820_v5 = vadd.f32 %v819_v4, %v1506_v26  ;;  %v907_v8 = vmax.f32 %v816_v1, 0.0 }
 0x23a   :  { %v908_v7 = vmax.f32 %v818_v3, 0.0 }
 0x23b   :  { %v909_v9 = vmax.f32 %v820_v5, 0.0 }
 0x23c   :  { %v949_v10 = vpack.c.bf16 %v908_v7, %v906_v6 }
 0x23d   :  { %v950_v11 = vpack.c.bf16 %v909_v9, %v907_v8  ;;  %v823_v12 = vpop.f32.mrb[48].mxu1  ;;  %v976_v9 = vrot.slane %v1514_v24, %v1520_v34 }
 0x23e   :  { %v824_v13 = vadd.f32 %v823_v12, %v1502_v16  ;;  %v825_v14 = vpop.f32.mrb[49].mxu1 }
 0x23f   :  { %v826_v15 = vadd.f32 %v825_v14, %v1506_v26  ;;  %v827_v27 = vpop.f32.mrb[50].mxu1  ;;  %1008 = vmatprep.subr.bf16.mxu0 %v950_v11 }
 0x240   :  { %v828_v17 = vadd.f32 %v827_v27, %v1502_v16  ;;  %v829_v18 = vpop.f32.mrb[51].mxu1  ;;  %1009 = vmatpush1.bf16.xpose.msra.mxu0 %v949_v10  ;;  %v910_v20 = vmax.f32 %v824_v13, 0.0 }
 0x241   :  { %v830_v19 = vadd.f32 %v829_v18, %v1506_v26  ;;  %v911_v0 = vmax.f32 %v826_v15, 0.0 }
 0x242   :  { %v912_v21 = vmax.f32 %v828_v17, 0.0 }
 0x243   :  { %v913_v28 = vmax.f32 %v830_v19, 0.0 }
 0x244   :  { %v951_v29 = vpack.c.bf16 %v912_v21, %v910_v20 }
 0x245   :  { %v952_v30 = vpack.c.bf16 %v913_v28, %v911_v0  ;;  %v833_v25 = vpop.f32.mrb[52].mxu1 }
 0x246   :  { %v834_v31 = vadd.f32 %v833_v25, %v1502_v16  ;;  %v835_v32 = vpop.f32.mrb[53].mxu1 }
 0x247   :  { %v836_v33 = vadd.f32 %v835_v32, %v1506_v26  ;;  %v837_v35 = vpop.f32.mrb[54].mxu1  ;;  %1010 = vmatprep.subr.bf16.mxu0 %v952_v30 }
 0x248   :  { %v838_v36 = vadd.f32 %v837_v35, %v1502_v16  ;;  %v839_v37 = vpop.f32.mrb[55].mxu1  ;;  %1011 = vmatpush1.bf16.xpose.msra.mxu0 %v951_v29  ;;  %v914_v39 = vmax.f32 %v834_v31, 0.0 }
 0x249   :  { %v840_v38 = vadd.f32 %v839_v37, %v1506_v26  ;;  %v915_v41 = vmax.f32 %v836_v33, 0.0 }
 0x24a   :  { %v916_v40 = vmax.f32 %v838_v36, 0.0 }
 0x24b   :  { %v917_v42 = vmax.f32 %v840_v38, 0.0 }
 0x24c   :  { %v953_v43 = vpack.c.bf16 %v916_v40, %v914_v39 }
 0x24d   :  { %v954_v44 = vpack.c.bf16 %v917_v42, %v915_v41  ;;  %v843_v45 = vpop.f32.mrb[56].mxu1 }
 0x24e   :  { %v844_v46 = vadd.f32 %v843_v45, %v1502_v16  ;;  %v845_v23 = vpop.f32.mrb[57].mxu1 }
 0x24f   :  { %v846_v47 = vadd.f32 %v845_v23, %v1506_v26  ;;  %v847_v48 = vpop.f32.mrb[58].mxu1  ;;  %1012 = vmatprep.subr.bf16.mxu0 %v954_v44 }
 0x250   :  { %v848_v49 = vadd.f32 %v847_v48, %v1502_v16  ;;  %v849_v50 = vpop.f32.mrb[59].mxu1  ;;  %1013 = vmatpush1.bf16.xpose.msra.mxu0 %v953_v43  ;;  %v918_v52 = vmax.f32 %v844_v46, 0.0 }
 0x251   :  { %v850_v51 = vadd.f32 %v849_v50, %v1506_v26  ;;  %v919_v54 = vmax.f32 %v846_v47, 0.0 }
 0x252   :  { %v920_v53 = vmax.f32 %v848_v49, 0.0 }
 0x253   :  { %v921_v55 = vmax.f32 %v850_v51, 0.0 }
 0x254   :  { %v955_v56 = vpack.c.bf16 %v920_v53, %v918_v52 }
 0x255   :  { %v956_v57 = vpack.c.bf16 %v921_v55, %v919_v54  ;;  %v853_v58 = vpop.f32.mrb[60].mxu1 }
 0x256   :  { %v854_v59 = vadd.f32 %v853_v58, %v1502_v16  ;;  %v855_v60 = vpop.f32.mrb[61].mxu1 }
 0x257   :  { %v856_v61 = vadd.f32 %v855_v60, %v1506_v26  ;;  %v857_v62 = vpop.f32.mrb[62].mxu1  ;;  %1014 = vmatprep.subr.bf16.mxu0 %v956_v57 }
 0x258   :  { %v858_v63 = vadd.f32 %v857_v62, %v1502_v16  ;;  %v859_v1 = vpop.f32.mrb[63].mxu1  ;;  %1015 = vmatpush1.bf16.xpose.msra.mxu0 %v955_v56  ;;  %v922_v3 = vmax.f32 %v854_v59, 0.0  ;;  %v960_v16 = vstv %s1600_s6 }
 0x259   :  { %v860_v2 = vadd.f32 %v859_v1, %v1506_v26  ;;  %v923_v5 = vmax.f32 %v856_v61, 0.0 }
 0x25a   :  { %v924_v4 = vmax.f32 %v858_v63, 0.0 }
 0x25b   :  { %v925_v6 = vmax.f32 %v860_v2, 0.0 }
 0x25c   :  { %v957_v7 = vpack.c.bf16 %v924_v4, %v922_v3 }
 0x25d   :  { %v958_v8 = vpack.c.bf16 %v925_v6, %v923_v5 }
 0x25f   :  { %1016 = vmatprep.subr.bf16.mxu0 %v958_v8 }
 0x260   :  { %1017 = vmatpush1.bf16.xpose.msra.mxu0 %v957_v7 }
 0x267   :  { %1019 = vmatmul.mubr.bf16.vlgmr.msra.gmra.mrb[64].mxu0 %v976_v9 }
 0x33a   :  { %v1020_v10 = vpop.f32.mrb[64].mxu0 }
 0x33b   :  { %v1021_v11 = vadd.f32 %v1020_v10, %v960_v16  ;;  %v1022_v12 = vpop.f32.mrb[65].mxu0 }
 0x33c   :  { %v1023_v26 = vadd.f32 %v1022_v12, %v960_v16  ;;  %v1024_v13 = vpop.f32.mrb[66].mxu0 }
 0x33d   :  { %v1025_v14 = vpop.f32.mrb[67].mxu0 }
 0x33e   :  { %v1029_v15 = vcombine.low %v1021_v11, %v1023_v26 }
 0x340   :  { %v1036_v27 = vrot.slane %v1029_v15, %v1520_v34 }
 0x342   :  { %v1043_v17 = vrot.slane %v1036_v27, %v1520_v34 }
 0x344   :  { %1049 = vst.msk [vmem:[%s1601_s7] sm:$0x3] %vm1047_vm2, %v1043_v17 }
 0x345   :  { %1054 = vsyncpa [#allocation4], 1 }
 0x346   :  { %1055 = vsyncpa [#allocation6], 1 }

</bundles_post_ra>
